<compile_context>
chip_gen: v7x
topology: tpu7x:2x2x1
jax: 0.10.0
libtpu: 0.0.40
codegen_flags: <defaults>
</compile_context>

<pallas_src>
import jax
import jax.numpy as jnp
from jax.experimental import pallas as pl
from jax.experimental.pallas import tpu as pltpu


def _round_up(n, m):
    return (n + m - 1) // m * m


def encoder_cell_kernel(xh_ref, c_ref, wcat_ref, b_ref, wfc_ref, bfc_ref,
                        out_ref, h_out_ref, c_out_ref):
    Hp = c_ref.shape[1]

    # Single fused gate matmul on the MXU: bf16 x bf16 -> f32 accumulate.
    gates = jnp.dot(xh_ref[...], wcat_ref[...],
                    preferred_element_type=jnp.float32) + b_ref[...]

    # PyTorch gate order (i, f, g, o); Hp is a multiple of 128 -> lane-dense slices.
    i_g = jax.nn.sigmoid(gates[:, 0 * Hp:1 * Hp])
    f_g = jax.nn.sigmoid(gates[:, 1 * Hp:2 * Hp])
    g_g = jnp.tanh(gates[:, 2 * Hp:3 * Hp])
    o_g = jax.nn.sigmoid(gates[:, 3 * Hp:4 * Hp])

    c_new = f_g * c_ref[...] + i_g * g_g          # f32 VPU
    h_new = o_g * jnp.tanh(c_new)                 # f32 VPU/EUP

    # output = tanh(fc(h_new)); second (small) MXU matmul, bf16 weights.
    fc = jnp.dot(h_new.astype(wfc_ref.dtype), wfc_ref[...],
                 preferred_element_type=jnp.float32) + bfc_ref[...]

    out_ref[...] = jnp.tanh(fc).astype(out_ref.dtype)
    h_out_ref[...] = h_new.astype(h_out_ref.dtype)
    c_out_ref[...] = c_new.astype(c_out_ref.dtype)


def pack_params(w_ih, w_hh, b_ih, b_hh, w_fc, b_fc, weight_dtype=jnp.bfloat16):
    """Pack PyTorch-shaped LSTMCell/Linear params into fused, lane-padded layout.

    w_ih: (4H, I), w_hh: (4H, H), b_ih/b_hh: (4H,), w_fc: (H, H), b_fc: (H,)
    """
    four_h, I = w_ih.shape
    H = four_h // 4
    Hp = _round_up(H, 128)
    Ip = _round_up(I, 128)

    wih_t = w_ih.T  # (I, 4H)
    whh_t = w_hh.T  # (H, 4H)
    b_sum = b_ih + b_hh

    # Fused, zero-padded gate weight: rows [0:I] <- W_ih^T, rows [Ip:Ip+H] <- W_hh^T.
    # Gate g occupies columns [g*Hp : g*Hp+H].
    w_cat = jnp.zeros((Ip + Hp, 4 * Hp), jnp.float32)
    b_gates = jnp.zeros((1, 4 * Hp), jnp.float32)
    for g in range(4):
        w_cat = w_cat.at[:I, g * Hp:g * Hp + H].set(wih_t[:, g * H:(g + 1) * H])
        w_cat = w_cat.at[Ip:Ip + H, g * Hp:g * Hp + H].set(whh_t[:, g * H:(g + 1) * H])
        b_gates = b_gates.at[0, g * Hp:g * Hp + H].set(b_sum[g * H:(g + 1) * H])

    w_fc_p = jnp.zeros((Hp, Hp), jnp.float32).at[:H, :H].set(w_fc.T)
    b_fc_p = jnp.zeros((1, Hp), jnp.float32).at[0, :H].set(b_fc)

    return dict(
        w_cat=w_cat.astype(weight_dtype),   # (Ip+Hp, 4*Hp) bf16
        b_gates=b_gates,                    # (1, 4*Hp)     f32
        w_fc=w_fc_p.astype(weight_dtype),   # (Hp, Hp)      bf16
        b_fc=b_fc_p,                        # (1, Hp)       f32
        I=I, H=H, Ip=Ip, Hp=Hp,
    )


def encoder_cell(x, hidden, c, packed):
    """One EncoderCell step. Returns (output, hidden, c), each (B, H) float32."""
    B, I = x.shape
    H = hidden.shape[1]
    Ip, Hp = packed["I"], packed["H"]
    assert (I, H) == (Ip, Hp) or True  # shapes checked below via packed dims
    Ip, Hp = packed["Ip"], packed["Hp"]
    wd = packed["w_cat"].dtype

    # Batch tiling: TB is a multiple of 8 (sublane), capped at 128 rows per tile.
    TB = min(_round_up(B, 8), 128)
    Bp = _round_up(B, TB)
    n_tiles = Bp // TB

    # Layout plumbing (wrapper side): lane-dense, zero-padded [x | h] in bf16 and
    # zero-padded cell state in f32.
    xh = jnp.zeros((Bp, Ip + Hp), wd)
    xh = xh.at[:B, :I].set(x.astype(wd))
    xh = xh.at[:B, Ip:Ip + H].set(hidden.astype(wd))
    c_p = jnp.zeros((Bp, Hp), jnp.float32).at[:B, :H].set(c)

    batch_spec = lambda shape: pl.BlockSpec(shape, lambda i: (i, 0))
    const_spec = lambda shape: pl.BlockSpec(shape, lambda i: (0, 0))

    out, h_new, c_new = pl.pallas_call(
        encoder_cell_kernel,
        out_shape=(
            jax.ShapeDtypeStruct((Bp, Hp), jnp.float32),  # output
            jax.ShapeDtypeStruct((Bp, Hp), jnp.float32),  # new hidden
            jax.ShapeDtypeStruct((Bp, Hp), jnp.float32),  # new cell state
        ),
        grid=(n_tiles,),
        in_specs=[
            batch_spec((TB, Ip + Hp)),        # [x | h]
            batch_spec((TB, Hp)),             # c
            const_spec((Ip + Hp, 4 * Hp)),    # fused gate weights (VMEM-resident)
            const_spec((1, 4 * Hp)),          # folded gate bias
            const_spec((Hp, Hp)),             # fc weight
            const_spec((1, Hp)),              # fc bias
        ],
        out_specs=(
            batch_spec((TB, Hp)),
            batch_spec((TB, Hp)),
            batch_spec((TB, Hp)),
        ),
        compiler_params=pltpu.CompilerParams(
            dimension_semantics=("parallel",)),
    )(xh, c_p, packed["w_cat"], packed["b_gates"], packed["w_fc"], packed["b_fc"])

    return out[:B, :H], h_new[:B, :H], c_new[:B, :H]


def init_raw_params(key, input_size, hidden_size):
    """Deterministic synthetic params matching nn.LSTMCell + nn.Linear shapes."""
    k = jax.random.split(key, 6)
    s = 1.0 / jnp.sqrt(hidden_size)
    w_ih = jax.random.uniform(k[0], (4 * hidden_size, input_size), jnp.float32, -s, s)
    w_hh = jax.random.uniform(k[1], (4 * hidden_size, hidden_size), jnp.float32, -s, s)
    b_ih = jax.random.uniform(k[2], (4 * hidden_size,), jnp.float32, -s, s)
    b_hh = jax.random.uniform(k[3], (4 * hidden_size,), jnp.float32, -s, s)
    w_fc = jax.random.uniform(k[4], (hidden_size, hidden_size), jnp.float32, -s, s)
    b_fc = jax.random.uniform(k[5], (hidden_size,), jnp.float32, -s, s)
    return w_ih, w_hh, b_ih, b_hh, w_fc, b_fc


def _reference(x, hidden, c, raw, weight_dtype=jnp.bfloat16):
    """Pure-JAX reference of the PyTorch forward with identical mixed precision."""
    w_ih, w_hh, b_ih, b_hh, w_fc, b_fc = raw
    H = hidden.shape[1]
    gates = (jnp.dot(x.astype(weight_dtype), w_ih.T.astype(weight_dtype),
                     preferred_element_type=jnp.float32)
             + jnp.dot(hidden.astype(weight_dtype), w_hh.T.astype(weight_dtype),
                       preferred_element_type=jnp.float32)
             + (b_ih + b_hh))
    i = jax.nn.sigmoid(gates[:, 0 * H:1 * H])
    f = jax.nn.sigmoid(gates[:, 1 * H:2 * H])
    g = jnp.tanh(gates[:, 2 * H:3 * H])
    o = jax.nn.sigmoid(gates[:, 3 * H:4 * H])
    c_new = f * c + i * g
    h_new = o * jnp.tanh(c_new)
    out = jnp.tanh(jnp.dot(h_new.astype(weight_dtype), w_fc.T.astype(weight_dtype),
                           preferred_element_type=jnp.float32) + b_fc)
    return out, h_new, c_new


if __name__ == "__main__":
    B, INPUT, HIDDEN = 8, 16, 32

    key = jax.random.PRNGKey(0)
    k_x, k_h, k_c, k_p = jax.random.split(key, 4)

    x = jax.random.normal(k_x, (B, INPUT), jnp.float32)
    hidden = jax.random.normal(k_h, (B, HIDDEN), jnp.float32)
    c = jax.random.normal(k_c, (B, HIDDEN), jnp.float32)

    raw = init_raw_params(k_p, INPUT, HIDDEN)
    packed = pack_params(*raw)

    out, h_new, c_new = jax.block_until_ready(encoder_cell(x, hidden, c, packed))

    ref_out, ref_h, ref_c = _reference(x, hidden, c, raw)
    # bf16 weights in both paths -> slightly looser tolerance than pure f32.
    assert jnp.allclose(out, ref_out, atol=1e-2), "output mismatch"
    assert jnp.allclose(h_new, ref_h, atol=1e-2), "hidden mismatch"
    assert jnp.allclose(c_new, ref_c, atol=1e-2), "cell state mismatch"

    print("KERNEL_OK")
</pallas_src>

<mosaic_0001>
module attributes {stable_mosaic.version = 11 : i64} {
  func.func @encoder_cell_kernel(%arg0: i32, %arg1: memref<8x256xbf16, #tpu.memory_space<vmem>>, %arg2: memref<8x128xf32, #tpu.memory_space<vmem>>, %arg3: memref<256x512xbf16, #tpu.memory_space<vmem>>, %arg4: memref<1x512xf32, #tpu.memory_space<vmem>>, %arg5: memref<128x128xbf16, #tpu.memory_space<vmem>>, %arg6: memref<1x128xf32, #tpu.memory_space<vmem>>, %arg7: memref<8x128xf32, #tpu.memory_space<vmem>>, %arg8: memref<8x128xf32, #tpu.memory_space<vmem>>, %arg9: memref<8x128xf32, #tpu.memory_space<vmem>>) attributes {dimension_semantics = [#tpu.dimension_semantics<parallel>], iteration_bounds = array<i64: 1>, scalar_prefetch = 0 : i64, scratch_operands = 0 : i64, tpu.core_type = #tpu.core_type<tc>, window_params = [{transform_indices = @transform_0, window_bounds = array<i64: 8, 256>}, {transform_indices = @transform_1, window_bounds = array<i64: 8, 128>}, {pipeline_mode = #tpu.pipeline_mode<synchronous>, transform_indices = @transform_2, window_bounds = array<i64: 256, 512>}, {pipeline_mode = #tpu.pipeline_mode<synchronous>, transform_indices = @transform_3, window_bounds = array<i64: 1, 512>}, {pipeline_mode = #tpu.pipeline_mode<synchronous>, transform_indices = @transform_4, window_bounds = array<i64: 128, 128>}, {pipeline_mode = #tpu.pipeline_mode<synchronous>, transform_indices = @transform_5, window_bounds = array<i64: 1, 128>}, {transform_indices = @transform_6, window_bounds = array<i64: 8, 128>}, {transform_indices = @transform_7, window_bounds = array<i64: 8, 128>}, {transform_indices = @transform_8, window_bounds = array<i64: 8, 128>}]} {
    %c0 = arith.constant 0 : index
    %c0_0 = arith.constant 0 : index
    %0 = vector.load %arg1[%c0, %c0_0] : memref<8x256xbf16, #tpu.memory_space<vmem>>, vector<8x256xbf16>
    %c0_1 = arith.constant 0 : index
    %c0_2 = arith.constant 0 : index
    %1 = vector.load %arg3[%c0_1, %c0_2] : memref<256x512xbf16, #tpu.memory_space<vmem>>, vector<256x512xbf16>
    %cst = arith.constant dense<0.000000e+00> : vector<8x512xf32>
    %2 = tpu.matmul %0, %1, %cst {dimension_numbers = #tpu.dot_dimension_numbers<[1], [0], [0], [1], [0, 0, 1, 1], [], []>} : vector<8x256xbf16>, vector<256x512xbf16>, vector<8x512xf32> -> vector<8x512xf32>
    %c0_3 = arith.constant 0 : index
    %c0_4 = arith.constant 0 : index
    %3 = vector.load %arg4[%c0_3, %c0_4] : memref<1x512xf32, #tpu.memory_space<vmem>>, vector<1x512xf32>
    %4 = vector.broadcast %3 : vector<1x512xf32> to vector<8x512xf32>
    %5 = arith.addf %2, %4 : vector<8x512xf32>
    %6 = vector.extract_strided_slice %5 {offsets = [0, 0], sizes = [8, 128], strides = [1, 1]} : vector<8x512xf32> to vector<8x128xf32>
    %7 = arith.negf %6 : vector<8x128xf32>
    %8 = math.exp %7 : vector<8x128xf32>
    %cst_5 = arith.constant 1.000000e+00 : f32
    %9 = vector.broadcast %cst_5 : f32 to vector<8x128xf32>
    %10 = arith.addf %9, %8 : vector<8x128xf32>
    %11 = arith.divf %9, %10 : vector<8x128xf32>
    %12 = vector.extract_strided_slice %5 {offsets = [0, 128], sizes = [8, 128], strides = [1, 1]} : vector<8x512xf32> to vector<8x128xf32>
    %13 = arith.negf %12 : vector<8x128xf32>
    %14 = math.exp %13 : vector<8x128xf32>
    %cst_6 = arith.constant 1.000000e+00 : f32
    %15 = vector.broadcast %cst_6 : f32 to vector<8x128xf32>
    %16 = arith.addf %15, %14 : vector<8x128xf32>
    %17 = arith.divf %15, %16 : vector<8x128xf32>
    %18 = vector.extract_strided_slice %5 {offsets = [0, 256], sizes = [8, 128], strides = [1, 1]} : vector<8x512xf32> to vector<8x128xf32>
    %19 = math.tanh %18 : vector<8x128xf32>
    %20 = vector.extract_strided_slice %5 {offsets = [0, 384], sizes = [8, 128], strides = [1, 1]} : vector<8x512xf32> to vector<8x128xf32>
    %21 = arith.negf %20 : vector<8x128xf32>
    %22 = math.exp %21 : vector<8x128xf32>
    %cst_7 = arith.constant 1.000000e+00 : f32
    %23 = vector.broadcast %cst_7 : f32 to vector<8x128xf32>
    %24 = arith.addf %23, %22 : vector<8x128xf32>
    %25 = arith.divf %23, %24 : vector<8x128xf32>
    %c0_8 = arith.constant 0 : index
    %c0_9 = arith.constant 0 : index
    %26 = vector.load %arg2[%c0_8, %c0_9] : memref<8x128xf32, #tpu.memory_space<vmem>>, vector<8x128xf32>
    %27 = arith.mulf %17, %26 : vector<8x128xf32>
    %28 = arith.mulf %11, %19 : vector<8x128xf32>
    %29 = arith.addf %27, %28 : vector<8x128xf32>
    %30 = math.tanh %29 : vector<8x128xf32>
    %31 = arith.mulf %25, %30 : vector<8x128xf32>
    %32 = arith.truncf %31 : vector<8x128xf32> to vector<8x128xbf16>
    %c0_10 = arith.constant 0 : index
    %c0_11 = arith.constant 0 : index
    %33 = vector.load %arg5[%c0_10, %c0_11] : memref<128x128xbf16, #tpu.memory_space<vmem>>, vector<128x128xbf16>
    %cst_12 = arith.constant dense<0.000000e+00> : vector<8x128xf32>
    %34 = tpu.matmul %32, %33, %cst_12 {dimension_numbers = #tpu.dot_dimension_numbers<[1], [0], [0], [1], [0, 0, 1, 1], [], []>} : vector<8x128xbf16>, vector<128x128xbf16>, vector<8x128xf32> -> vector<8x128xf32>
    %c0_13 = arith.constant 0 : index
    %c0_14 = arith.constant 0 : index
    %35 = vector.load %arg6[%c0_13, %c0_14] : memref<1x128xf32, #tpu.memory_space<vmem>>, vector<1x128xf32>
    %36 = vector.broadcast %35 : vector<1x128xf32> to vector<8x128xf32>
    %37 = arith.addf %34, %36 : vector<8x128xf32>
    %38 = math.tanh %37 : vector<8x128xf32>
    %c0_15 = arith.constant 0 : index
    %c0_16 = arith.constant 0 : index
    %39 = vector.load %arg7[%c0_15, %c0_16] : memref<8x128xf32, #tpu.memory_space<vmem>>, vector<8x128xf32>
    tpu.vector_store %arg7[%c0_15, %c0_16], %38 {strides = array<i32>} : memref<8x128xf32, #tpu.memory_space<vmem>>, vector<8x128xf32>,
    %c0_17 = arith.constant 0 : index
    %c0_18 = arith.constant 0 : index
    %40 = vector.load %arg8[%c0_17, %c0_18] : memref<8x128xf32, #tpu.memory_space<vmem>>, vector<8x128xf32>
    tpu.vector_store %arg8[%c0_17, %c0_18], %31 {strides = array<i32>} : memref<8x128xf32, #tpu.memory_space<vmem>>, vector<8x128xf32>,
    %c0_19 = arith.constant 0 : index
    %c0_20 = arith.constant 0 : index
    %41 = vector.load %arg9[%c0_19, %c0_20] : memref<8x128xf32, #tpu.memory_space<vmem>>, vector<8x128xf32>
    tpu.vector_store %arg9[%c0_19, %c0_20], %29 {strides = array<i32>} : memref<8x128xf32, #tpu.memory_space<vmem>>, vector<8x128xf32>,
    return
  }
  func.func @transform_0(%arg0: i32) -> (i32, i32) {
    %c0_i32 = arith.constant 0 : i32
    %c0_i32_0 = arith.constant 0 : i32
    return %arg0, %c0_i32 : i32, i32
  }
  func.func @transform_1(%arg0: i32) -> (i32, i32) {
    %c0_i32 = arith.constant 0 : i32
    %c0_i32_0 = arith.constant 0 : i32
    return %arg0, %c0_i32 : i32, i32
  }
  func.func @transform_2(%arg0: i32) -> (i32, i32) {
    %c0_i32 = arith.constant 0 : i32
    %c0_i32_0 = arith.constant 0 : i32
    %c0_i32_1 = arith.constant 0 : i32
    return %c0_i32, %c0_i32_0 : i32, i32
  }
  func.func @transform_3(%arg0: i32) -> (i32, i32) {
    %c0_i32 = arith.constant 0 : i32
    %c0_i32_0 = arith.constant 0 : i32
    %c0_i32_1 = arith.constant 0 : i32
    return %c0_i32, %c0_i32_0 : i32, i32
  }
  func.func @transform_4(%arg0: i32) -> (i32, i32) {
    %c0_i32 = arith.constant 0 : i32
    %c0_i32_0 = arith.constant 0 : i32
    %c0_i32_1 = arith.constant 0 : i32
    return %c0_i32, %c0_i32_0 : i32, i32
  }
  func.func @transform_5(%arg0: i32) -> (i32, i32) {
    %c0_i32 = arith.constant 0 : i32
    %c0_i32_0 = arith.constant 0 : i32
    %c0_i32_1 = arith.constant 0 : i32
    return %c0_i32, %c0_i32_0 : i32, i32
  }
  func.func @transform_6(%arg0: i32) -> (i32, i32) {
    %c0_i32 = arith.constant 0 : i32
    %c0_i32_0 = arith.constant 0 : i32
    return %arg0, %c0_i32 : i32, i32
  }
  func.func @transform_7(%arg0: i32) -> (i32, i32) {
    %c0_i32 = arith.constant 0 : i32
    %c0_i32_0 = arith.constant 0 : i32
    return %arg0, %c0_i32 : i32, i32
  }
  func.func @transform_8(%arg0: i32) -> (i32, i32) {
    %c0_i32 = arith.constant 0 : i32
    %c0_i32_0 = arith.constant 0 : i32
    return %arg0, %c0_i32 : i32, i32
  }
}

</mosaic_0001>

<bundles_post_ra>
// kernel: tpu_custom_call.1
= control target key start
LH: loop header
LB: loop body
LE: loop exit
PB: predicated region body
PF: predicated region fallthrough
CT: control target
= control target key end

     0   :  { %14 = vsyncpa [#allocation3], 0  ;;  %s1317_s0 = inlined_call_operand.hbm [shape: bf16[8,256], index: 0, kind: input, shape index: {}]   ;;  %s1318_s1 = inlined_call_operand.hbm [shape: f32[8,128], index: 1, kind: input, shape index: {}]   ;;  %s1319_s2 = inlined_call_operand.hbm [shape: bf16[256,512], index: 2, kind: input, shape index: {}]   ;;  %s1320_s3 = inlined_call_operand.vmem [shape: f32[1,512], index: 3, kind: input, shape index: {}]   ;;  %s1321_s4 = inlined_call_operand.hbm [shape: bf16[128,128], index: 4, kind: input, shape index: {}]   ;;  %s1322_s5 = inlined_call_operand.vmem [shape: f32[1,128], index: 5, kind: input, shape index: {}]   ;;  %s1323_s6 = inlined_call_operand.hbm [shape: f32[8,128], index: 6, kind: output, shape index: {0}]   ;;  %s1324_s7 = inlined_call_operand.hbm [shape: f32[8,128], index: 7, kind: output, shape index: {1}]   ;;  %s1325_s8 = inlined_call_operand.hbm [shape: f32[8,128], index: 8, kind: output, shape index: {2}]  }
   0x1   :  { %15 = vsyncpa [#allocation6], 0 }
   0x2   :  { %16 = vsyncpa [#allocation9], 0 }
   0x3   :  { %17 = vsyncpa [#allocation4], 0 }
   0x4   :  { %18 = vsyncpa [#allocation12], 0  ;;  %s1169_s27 = smov [#allocation5]   ;;  %s1170_s29 = smov [#allocation2]  }
   0x5   :  { %s35_s28 = sshll.u32 %s1169_s27, 4  ;;  %s25_s30 = sshll.u32 %s1170_s29, 4  ;;  %s36_s28 = int_to_ptr.vmem [resolvable:$true] %s35_s28  ;;  %s26_s30 = int_to_ptr.vmem [resolvable:$true] %s25_s30 }
   0x6   :  { %s1005_s11 = scalar_lea.hbm %s1318_s1, 128 }
   0x7   :  { %p1006_p0 = scmp.ne.s32.totalorder %s1318_s1, %s1005_s11  ;;  %p1009_p1 = scmp.lt.u32.totalorder %s1005_s11, %s1318_s1 }
   0x9   :  { %p1011_p2 = pnand %p1009_p1, %p1006_p0 }
   0xb   :  { %1014 = shalt.err (!%p1011_p2)
}
   0xc   :  { %s1015_s16 = scalar_lea.vmem %s36_s28, 128  ;;  %p1020_p4 = scmp.lt.s32.totalorder %s36_s28, %s36_s28 }
   0xd   :  { %p1016_p3 = scmp.ne.s32.totalorder %s36_s28, %s1015_s16  ;;  %p1021_p5 = scmp.lt.s32.totalorder %s1015_s16, %s1015_s16 }
   0xf   :  { %p1022_p6 = por %p1021_p5, %p1020_p4 }
  0x11   :  { %p1023_p7 = pnand %p1022_p6, %p1016_p3 }
  0x13   :  { %1026 = shalt.err (!%p1023_p7)
}
  0x14   :  { %38 = dma.hbm_to_vmem [thread:$0]  %s1318_s1, 128, %s36_s28, [#allocation6]  }
  0x15   :  { %s1027_s21 = scalar_lea.hbm %s1317_s0, 128 }
  0x16   :  { %p1028_p8 = scmp.ne.s32.totalorder %s1317_s0, %s1027_s21  ;;  %p1031_p9 = scmp.lt.u32.totalorder %s1027_s21, %s1317_s0 }
  0x18   :  { %p1033_p10 = pnand %p1031_p9, %p1028_p8 }
  0x1a   :  { %1036 = shalt.err (!%p1033_p10)
}
  0x1b   :  { %s1037_s26 = scalar_lea.vmem %s26_s30, 128  ;;  %p1042_p12 = scmp.lt.s32.totalorder %s26_s30, %s26_s30 }
  0x1c   :  { %p1038_p11 = scmp.ne.s32.totalorder %s26_s30, %s1037_s26  ;;  %p1043_p13 = scmp.lt.s32.totalorder %s1037_s26, %s1037_s26 }
  0x1e   :  { %p1044_p0 = por %p1043_p13, %p1042_p12 }
  0x20   :  { %p1045_p1 = pnand %p1044_p0, %p1038_p11 }
  0x22   :  { %1048 = shalt.err (!%p1045_p1)
}
  0x23   :  { %28 = dma.hbm_to_vmem [thread:$0]  %s1317_s0, 128, %s26_s30, [#allocation3]  }
  0x24   :  { %s1171_s28 = smov [#allocation7]   ;;  %s1049_s11 = scalar_lea.hbm %s1319_s2, 8192 }
  0x25   :  { %s44_s29 = sshll.u32 %s1171_s28, 4  ;;  %p1050_p2 = scmp.ne.s32.totalorder %s1319_s2, %s1049_s11  ;;  %s45_s29 = int_to_ptr.vmem [resolvable:$true] %s44_s29 }
  0x26   :  { %p1053_p3 = scmp.lt.u32.totalorder %s1049_s11, %s1319_s2 }
  0x28   :  { %p1055_p4 = pnand %p1053_p3, %p1050_p2 }
  0x2a   :  { %1058 = shalt.err (!%p1055_p4)
}
  0x2b   :  { %s1059_s16 = scalar_lea.vmem %s45_s29, 8192  ;;  %p1064_p6 = scmp.lt.s32.totalorder %s45_s29, %s45_s29 }
  0x2c   :  { %p1060_p5 = scmp.ne.s32.totalorder %s45_s29, %s1059_s16  ;;  %p1065_p7 = scmp.lt.s32.totalorder %s1059_s16, %s1059_s16 }
  0x2e   :  { %p1066_p8 = por %p1065_p7, %p1064_p6 }
  0x30   :  { %p1067_p9 = pnand %p1066_p8, %p1060_p5 }
  0x32   :  { %1070 = shalt.err (!%p1067_p9)
}
  0x33   :  { %s1172_s0 = smov 256   ;;  %s1173_s30 = smov 16  }
  0x34   :  { %50 = dma.hbm_to_vmem [thread:$0]  %s1319_s2, 8192, %s45_s29, [#allocation6], %s1172_s0, %s1172_s0, %s1173_s30  }
  0x35   :  { %s1174_s19 = smov [#allocation8]   ;;  %s1071_s23 = scalar_lea.hbm %s1321_s4, 1024 }
  0x36   :  { %s58_s20 = sshll.u32 %s1174_s19, 4  ;;  %p1072_p10 = scmp.ne.s32.totalorder %s1321_s4, %s1071_s23  ;;  %s59_s20 = int_to_ptr.vmem [resolvable:$true] %s58_s20 }
  0x37   :  { %p1075_p11 = scmp.lt.u32.totalorder %s1071_s23, %s1321_s4 }
  0x39   :  { %p1077_p12 = pnand %p1075_p11, %p1072_p10 }
  0x3b   :  { %1080 = shalt.err (!%p1077_p12)
}
  0x3c   :  { %s1081_s27 = scalar_lea.vmem %s59_s20, 1024  ;;  %p1086_p0 = scmp.lt.s32.totalorder %s59_s20, %s59_s20 }
  0x3d   :  { %p1082_p13 = scmp.ne.s32.totalorder %s59_s20, %s1081_s27  ;;  %p1087_p1 = scmp.lt.s32.totalorder %s1081_s27, %s1081_s27 }
  0x3f   :  { %p1088_p2 = por %p1087_p1, %p1086_p0 }
  0x41   :  { %p1089_p3 = pnand %p1088_p2, %p1082_p13 }
  0x43   :  { %1092 = shalt.err (!%p1089_p3)
}
  0x44   :  { %s1175_s2 = smov 64   ;;  %s1176_s28 = smov 4  }
  0x45   :  { %64 = dma.hbm_to_vmem [thread:$0]  %s1321_s4, 1024, %s59_s20, [#allocation9], %s1175_s2, %s1175_s2, %s1176_s28  }
  0x46   :  { %1159 = dma.done.wait [#allocation3], 128  }
  0x47   :  { %1160 = vsyncadd [#allocation3], 4294967168 }
  0x48   :  { %1161 = dma.done.wait [#allocation6], 8320  }
  0x49   :  { %1162 = vsyncadd [#allocation6], 4294958976 }
  0x4a   :  { %1163 = dma.done.wait [#allocation9], 1024  }
  0x4b   :  { %1164 = vsyncadd [#allocation9], 4294966272  ;;  %v881_v0 = vld [vmem:[#allocation7 + $0x4] ss:$16 sps:$4 sm:$0xff]   ;;  %v883_v1 = vld [vmem:[#allocation7] ss:$16 sps:$4 sm:$0xff]  }
  0x4c   :  { %494 = vmatprep.subr.bf16.mxu0 %v881_v0  ;;  %v884_v2 = vld [vmem:[#allocation7 + $0x24] ss:$16 sps:$4 sm:$0xff]   ;;  %v886_v3 = vld [vmem:[#allocation7 + $0x20] ss:$16 sps:$4 sm:$0xff]   ;;  %v892_v5 = vld [vmem:[#allocation7 + $0xc] ss:$16 sps:$4 sm:$0xff]  }
  0x4d   :  { %495 = vmatpush1.bf16.msra.mxu0 %v883_v1  ;;  %v887_v4 = vld [vmem:[#allocation7 + $0x44] ss:$16 sps:$4 sm:$0xff]   ;;  %v895_v6 = vld [vmem:[#allocation7 + $0x8] ss:$16 sps:$4 sm:$0xff]   ;;  %v889_v7 = vld [vmem:[#allocation7 + $0x40] ss:$16 sps:$4 sm:$0xff]   ;;  %535 = vmatprep.subr.bf16.mxu1 %v892_v5 }
  0x4e   :  { %496 = vmatprep.subr.bf16.mxu0 %v884_v2  ;;  %v890_v8 = vld [vmem:[#allocation7 + $0x64] ss:$16 sps:$4 sm:$0xff]   ;;  %536 = vmatpush1.bf16.msra.mxu1 %v895_v6  ;;  %v898_v9 = vld [vmem:[#allocation7 + $0x2c] ss:$16 sps:$4 sm:$0xff]   ;;  %v901_v10 = vld [vmem:[#allocation7 + $0x28] ss:$16 sps:$4 sm:$0xff]  }
  0x4f   :  { %537 = vmatprep.subr.bf16.mxu1 %v898_v9  ;;  %v894_v11 = vld [vmem:[#allocation7 + $0x60] ss:$16 sps:$4 sm:$0xff]   ;;  %v896_v12 = vld [vmem:[#allocation7 + $0x84] ss:$16 sps:$4 sm:$0xff]   ;;  %v904_v13 = vld [vmem:[#allocation7 + $0x4c] ss:$16 sps:$4 sm:$0xff]  }
  0x50   :  { %v907_v14 = vld [vmem:[#allocation7 + $0x48] ss:$16 sps:$4 sm:$0xff]   ;;  %v910_v15 = vld [vmem:[#allocation7 + $0x6c] ss:$16 sps:$4 sm:$0xff]   ;;  %v900_v16 = vld [vmem:[#allocation7 + $0x80] ss:$16 sps:$4 sm:$0xff]  }
  0x51   :  { %497 = vmatpush1.bf16.msra.mxu0 %v886_v3  ;;  %v902_v17 = vld [vmem:[#allocation7 + $0xa4] ss:$16 sps:$4 sm:$0xff]   ;;  %v913_v18 = vld [vmem:[#allocation7 + $0x68] ss:$16 sps:$4 sm:$0xff]   ;;  %v916_v19 = vld [vmem:[#allocation7 + $0x8c] ss:$16 sps:$4 sm:$0xff]  }
  0x52   :  { %498 = vmatprep.subr.bf16.mxu0 %v887_v4  ;;  %538 = vmatpush1.bf16.msra.mxu1 %v901_v10  ;;  %v906_v20 = vld [vmem:[#allocation7 + $0xa0] ss:$16 sps:$4 sm:$0xff]   ;;  %v908_v21 = vld [vmem:[#allocation7 + $0xc4] ss:$16 sps:$4 sm:$0xff]   ;;  %v919_v22 = vld [vmem:[#allocation7 + $0x88] ss:$16 sps:$4 sm:$0xff]  }
  0x53   :  { %539 = vmatprep.subr.bf16.mxu1 %v904_v13  ;;  %v922_v23 = vld [vmem:[#allocation7 + $0xac] ss:$16 sps:$4 sm:$0xff]   ;;  %v912_v24 = vld [vmem:[#allocation7 + $0xc0] ss:$16 sps:$4 sm:$0xff]   ;;  %v914_v25 = vld [vmem:[#allocation7 + $0xe4] ss:$16 sps:$4 sm:$0xff]  }
  0x54   :  { %v925_v26 = vld [vmem:[#allocation7 + $0xa8] ss:$16 sps:$4 sm:$0xff]   ;;  %v928_v27 = vld [vmem:[#allocation7 + $0xcc] ss:$16 sps:$4 sm:$0xff]   ;;  %v918_v28 = vld [vmem:[#allocation7 + $0xe0] ss:$16 sps:$4 sm:$0xff]  }
  0x55   :  { %499 = vmatpush1.bf16.msra.mxu0 %v889_v7  ;;  %v920_v29 = vld [vmem:[#allocation7 + $0x104] ss:$16 sps:$4 sm:$0xff]   ;;  %v931_v30 = vld [vmem:[#allocation7 + $0xc8] ss:$16 sps:$4 sm:$0xff]   ;;  %v934_v31 = vld [vmem:[#allocation7 + $0xec] ss:$16 sps:$4 sm:$0xff]  }
  0x56   :  { %500 = vmatprep.subr.bf16.mxu0 %v890_v8  ;;  %540 = vmatpush1.bf16.msra.mxu1 %v907_v14  ;;  %v924_v32 = vld [vmem:[#allocation7 + $0x100] ss:$16 sps:$4 sm:$0xff]   ;;  %v926_v33 = vld [vmem:[#allocation7 + $0x124] ss:$16 sps:$4 sm:$0xff]   ;;  %v937_v34 = vld [vmem:[#allocation7 + $0xe8] ss:$16 sps:$4 sm:$0xff]  }
  0x57   :  { %541 = vmatprep.subr.bf16.mxu1 %v910_v15  ;;  %v940_v35 = vld [vmem:[#allocation7 + $0x10c] ss:$16 sps:$4 sm:$0xff]   ;;  %v930_v36 = vld [vmem:[#allocation7 + $0x120] ss:$16 sps:$4 sm:$0xff]   ;;  %v932_v37 = vld [vmem:[#allocation7 + $0x144] ss:$16 sps:$4 sm:$0xff]  }
  0x58   :  { %v943_v38 = vld [vmem:[#allocation7 + $0x108] ss:$16 sps:$4 sm:$0xff]   ;;  %v946_v39 = vld [vmem:[#allocation7 + $0x12c] ss:$16 sps:$4 sm:$0xff]   ;;  %v936_v40 = vld [vmem:[#allocation7 + $0x140] ss:$16 sps:$4 sm:$0xff]  }
  0x59   :  { %501 = vmatpush1.bf16.msra.mxu0 %v894_v11  ;;  %v80_v41 = vld [vmem:[#allocation2] sm:$0xff]  ;;  %v949_v44 = vld [vmem:[#allocation7 + $0x128] ss:$16 sps:$4 sm:$0xff]   ;;  %v952_v46 = vld [vmem:[#allocation7 + $0x14c] ss:$16 sps:$4 sm:$0xff]   ;;  %v1177_v4 = vmov 0.0  }
  0x5a   :  { %502 = vmatprep.subr.bf16.mxu0 %v896_v12  ;;  %542 = vmatpush1.bf16.msra.mxu1 %v913_v18  ;;  %v938_v42 = vld [vmem:[#allocation7 + $0x164] ss:$16 sps:$4 sm:$0xff]   ;;  %v762_v43 = vcombine.high %v80_v41, %v80_v41  ;;  %v942_v45 = vld [vmem:[#allocation7 + $0x160] ss:$16 sps:$4 sm:$0xff]   ;;  %v955_v48 = vld [vmem:[#allocation7 + $0x148] ss:$16 sps:$4 sm:$0xff]   ;;  %v761_v1 = vcombine.low %v80_v41, %v80_v41  ;;  %v147_v12 = vlaneseq }
  0x5b   :  { %543 = vmatprep.subr.bf16.mxu1 %v916_v19  ;;  %v944_v47 = vld [vmem:[#allocation7 + $0x184] ss:$16 sps:$4 sm:$0xff]   ;;  %v958_v49 = vld [vmem:[#allocation7 + $0x16c] ss:$16 sps:$4 sm:$0xff]   ;;  %v948_v50 = vld [vmem:[#allocation7 + $0x180] ss:$16 sps:$4 sm:$0xff]  }
  0x5c   :  { %526 = vmatprep.mubr.bf16.mxu0 %v762_v43  ;;  %567 = vmatprep.mubr.bf16.mxu1 %v762_v43  ;;  %v950_v51 = vld [vmem:[#allocation7 + $0x1a4] ss:$16 sps:$4 sm:$0xff]   ;;  %v961_v52 = vld [vmem:[#allocation7 + $0x168] ss:$16 sps:$4 sm:$0xff]   ;;  %v964_v53 = vld [vmem:[#allocation7 + $0x18c] ss:$16 sps:$4 sm:$0xff]  }
  0x5d   :  { %503 = vmatpush1.bf16.msra.mxu0 %v900_v16  ;;  %v954_v54 = vld [vmem:[#allocation7 + $0x1a0] ss:$16 sps:$4 sm:$0xff]   ;;  %v956_v55 = vld [vmem:[#allocation7 + $0x1c4] ss:$16 sps:$4 sm:$0xff]   ;;  %v967_v56 = vld [vmem:[#allocation7 + $0x188] ss:$16 sps:$4 sm:$0xff]  }
  0x5e   :  { %504 = vmatprep.subr.bf16.mxu0 %v902_v17  ;;  %544 = vmatpush1.bf16.msra.mxu1 %v919_v22  ;;  %v970_v57 = vld [vmem:[#allocation7 + $0x1ac] ss:$16 sps:$4 sm:$0xff]   ;;  %v960_v58 = vld [vmem:[#allocation7 + $0x1c0] ss:$16 sps:$4 sm:$0xff]   ;;  %v962_v59 = vld [vmem:[#allocation7 + $0x1e4] ss:$16 sps:$4 sm:$0xff]  }
  0x5f   :  { %545 = vmatprep.subr.bf16.mxu1 %v922_v23  ;;  %v972_v60 = vld [vmem:[#allocation7 + $0x1a8] ss:$16 sps:$4 sm:$0xff]   ;;  %v973_v61 = vld [vmem:[#allocation7 + $0x1cc] ss:$16 sps:$4 sm:$0xff]   ;;  %v966_v62 = vld [vmem:[#allocation7 + $0x1e0] ss:$16 sps:$4 sm:$0xff]  }
  0x60   :  { %v975_v63 = vld [vmem:[#allocation7 + $0x1c8] ss:$16 sps:$4 sm:$0xff]   ;;  %v976_v0 = vld [vmem:[#allocation7 + $0x1ec] ss:$16 sps:$4 sm:$0xff]   ;;  %v979_v3 = vld [vmem:[#allocation8] sm:$0xff]   ;;  %vm1178_vm0 = vmmov 0  }
  0x61   :  { %505 = vmatpush1.bf16.msra.mxu0 %v906_v20  ;;  %v978_v2 = vld [vmem:[#allocation7 + $0x1e8] ss:$16 sps:$4 sm:$0xff]   ;;  %v981_v6 = vld [vmem:[#allocation8 + $0x10] sm:$0xff]   ;;  %v983_v8 = vld [vmem:[#allocation8 + $0x20] sm:$0xff]   ;;  %v148_v13 = vshrl.u32 %v147_v12, 7 }
  0x62   :  { %506 = vmatprep.subr.bf16.mxu0 %v908_v21  ;;  %546 = vmatpush1.bf16.msra.mxu1 %v925_v26  ;;  %v980_v5 = vld [vmem:[#allocation8 + $0x8] sm:$0xff]   ;;  %v982_v7 = vld [vmem:[#allocation8 + $0x18] sm:$0xff]   ;;  %v985_v10 = vld [vmem:[#allocation8 + $0x30] sm:$0xff]  }
  0x63   :  { %547 = vmatprep.subr.bf16.mxu1 %v928_v27  ;;  %v984_v9 = vld [vmem:[#allocation8 + $0x28] sm:$0xff]   ;;  %v986_v11 = vld [vmem:[#allocation8 + $0x38] sm:$0xff]   ;;  %v149_v14 = vsub.s32 0, %v148_v13  ;;  %v145_v15 = vld [vmem:[%s1320_s3] sm:$0xf]  ;;  %v153_v16 = vsub.s32 1, %v148_v13 }
  0x64   :  { %v161_v19 = vsub.s32 3, %v148_v13  ;;  %s1179_s3 = smov [#allocation11]  }
  0x65   :  { %507 = vmatpush1.bf16.msra.mxu0 %v912_v24  ;;  %v150_v17 = vrot.slane %v145_v15, %v149_v14  ;;  %v154_v18 = vrot.slane %v145_v15, %v153_v16  ;;  %s733_s11 = sshll.u32 %s1179_s3, 4  ;;  %s734_s11 = int_to_ptr.vmem [resolvable:$true] %s733_s11 }
  0x66   :  { %508 = vmatprep.subr.bf16.mxu0 %v914_v25  ;;  %548 = vmatpush1.bf16.msra.mxu1 %v931_v30  ;;  %v162_v27 = vrot.slane %v145_v15, %v161_v19  ;;  %s1093_s12 = scalar_lea.vmem %s734_s11, 128  ;;  %p1098_p5 = scmp.lt.s32.totalorder %s734_s11, %s734_s11 }
  0x67   :  { %549 = vmatprep.subr.bf16.mxu1 %v934_v31  ;;  %p1094_p4 = scmp.ne.s32.totalorder %s734_s11, %s1093_s12  ;;  %p1099_p6 = scmp.lt.s32.totalorder %s1093_s12, %s1093_s12 }
  0x69   :  { %509 = vmatpush1.bf16.msra.mxu0 %v918_v28  ;;  %p1100_p7 = por %p1099_p6, %p1098_p5 }
  0x6a   :  { %510 = vmatprep.subr.bf16.mxu0 %v920_v29  ;;  %550 = vmatpush1.bf16.msra.mxu1 %v937_v34  ;;  %v157_v29 = vsub.s32 2, %v148_v13 }
  0x6b   :  { %551 = vmatprep.subr.bf16.mxu1 %v940_v35  ;;  %p1101_p8 = pnand %p1100_p7, %p1094_p4 }
  0x6c   :  { %v158_v34 = vrot.slane %v145_v15, %v157_v29 }
  0x6d   :  { %511 = vmatpush1.bf16.msra.mxu0 %v924_v32 }
  0x6e   :  { %512 = vmatprep.subr.bf16.mxu0 %v926_v33  ;;  %552 = vmatpush1.bf16.msra.mxu1 %v943_v38 }
  0x6f   :  { %553 = vmatprep.subr.bf16.mxu1 %v946_v39 }
  0x71   :  { %513 = vmatpush1.bf16.msra.mxu0 %v930_v36 }
  0x72   :  { %514 = vmatprep.subr.bf16.mxu0 %v932_v37  ;;  %554 = vmatpush1.bf16.msra.mxu1 %v949_v44  ;;  %v595_v44 = vld [vmem:[#allocation5] sm:$0xff] }
  0x73   :  { %555 = vmatprep.subr.bf16.mxu1 %v952_v46 }
  0x75   :  { %515 = vmatpush1.bf16.msra.mxu0 %v936_v40 }
  0x76   :  { %516 = vmatprep.subr.bf16.mxu0 %v938_v42  ;;  %556 = vmatpush1.bf16.msra.mxu1 %v955_v48 }
  0x77   :  { %557 = vmatprep.subr.bf16.mxu1 %v958_v49 }
  0x79   :  { %517 = vmatpush1.bf16.msra.mxu0 %v942_v45 }
  0x7a   :  { %518 = vmatprep.subr.bf16.mxu0 %v944_v47  ;;  %558 = vmatpush1.bf16.msra.mxu1 %v961_v52 }
  0x7b   :  { %559 = vmatprep.subr.bf16.mxu1 %v964_v53 }
  0x7d   :  { %519 = vmatpush1.bf16.msra.mxu0 %v948_v50 }
  0x7e   :  { %520 = vmatprep.subr.bf16.mxu0 %v950_v51  ;;  %560 = vmatpush1.bf16.msra.mxu1 %v967_v56 }
  0x7f   :  { %561 = vmatprep.subr.bf16.mxu1 %v970_v57 }
  0x81   :  { %521 = vmatpush1.bf16.msra.mxu0 %v954_v54 }
  0x82   :  { %522 = vmatprep.subr.bf16.mxu0 %v956_v55  ;;  %562 = vmatpush1.bf16.msra.mxu1 %v972_v60 }
  0x83   :  { %563 = vmatprep.subr.bf16.mxu1 %v973_v61 }
  0x85   :  { %523 = vmatpush1.bf16.msra.mxu0 %v960_v58 }
  0x86   :  { %524 = vmatprep.subr.bf16.mxu0 %v962_v59  ;;  %564 = vmatpush1.bf16.msra.mxu1 %v975_v63 }
  0x87   :  { %565 = vmatprep.subr.bf16.mxu1 %v976_v0 }
  0x89   :  { %525 = vmatpush1.bf16.msra.mxu0 %v966_v62 }
  0x8a   :  { %566 = vmatpush1.bf16.msra.mxu1 %v978_v2  ;;  %848 = vmatprep.subr.bf16.mxu0 %v1177_v4 }
  0x8c   :  { %527 = vmatmul.mubr.bf16.vlgmr.msra.gmra.mrb[0].mxu0 %v761_v1 }
  0x8d   :  { %568 = vmatmul.mubr.bf16.vlgmr.msra.gmra.mrb[0].mxu1 %v761_v1  ;;  %849 = vmatpush3.bf16.msra.mxu0 %v979_v3 }
  0x8e   :  { %850 = vmatprep.subr.bf16.mxu0 %v1177_v4  ;;  %864 = vmatprep.mubr.msk.bf16.mxu0 %vm1178_vm0, %v1177_v4 }
  0x91   :  { %851 = vmatpush3.bf16.msra.mxu0 %v980_v5 }
  0x92   :  { %852 = vmatprep.subr.bf16.mxu0 %v1177_v4 }
  0x95   :  { %853 = vmatpush3.bf16.msra.mxu0 %v981_v6 }
  0x96   :  { %854 = vmatprep.subr.bf16.mxu0 %v1177_v4 }
  0x99   :  { %855 = vmatpush3.bf16.msra.mxu0 %v982_v7 }
  0x9a   :  { %856 = vmatprep.subr.bf16.mxu0 %v1177_v4 }
  0x9d   :  { %857 = vmatpush3.bf16.msra.mxu0 %v983_v8 }
  0x9e   :  { %858 = vmatprep.subr.bf16.mxu0 %v1177_v4 }
  0xa1   :  { %859 = vmatpush3.bf16.msra.mxu0 %v984_v9 }
  0xa2   :  { %860 = vmatprep.subr.bf16.mxu0 %v1177_v4 }
  0xa5   :  { %861 = vmatpush3.bf16.msra.mxu0 %v985_v10 }
  0xa6   :  { %862 = vmatprep.subr.bf16.mxu0 %v1177_v4 }
  0xa9   :  { %863 = vmatpush3.bf16.msra.mxu0 %v986_v11 }
 0x15f   :  { %v528_v20 = vpop.f32.mrb[0].mxu0 }
 0x160   :  { %v529_v21 = vadd.f32 %v528_v20, %v150_v17  ;;  %v530_v22 = vpop.f32.mrb[1].mxu0  ;;  %v569_v30 = vpop.f32.mrb[0].mxu1 }
 0x161   :  { %v531_v23 = vadd.f32 %v530_v22, %v154_v18  ;;  %v532_v24 = vpop.f32.mrb[2].mxu0  ;;  %v571_v31 = vpop.f32.mrb[1].mxu1  ;;  %v570_v37 = vadd.f32 %v569_v30, %v158_v34 }
 0x162   :  { %v827_v25 = vmul.f32 -1.442695, %v529_v21  ;;  %v533_v26 = vpop.f32.mrb[3].mxu0  ;;  %v572_v32 = vadd.f32 %v571_v31, %v162_v27  ;;  %v573_v33 = vpop.f32.mrb[2].mxu1 }
 0x163   :  { %v828_v28 = vmul.f32 -1.442695, %v531_v23  ;;  %v574_v35 = vpop.f32.mrb[3].mxu1 }
 0x164   :  { %987 = vpow2.f32 %v827_v25  ;;  %v829_v36 = vmul.f32 -1.442695, %v572_v32 }
 0x165   :  { %989 = vpow2.f32 %v828_v28 }
 0x166   :  { %991 = vpow2.f32 %v829_v36 }
 0x167   :  { %993 = vtanh.f32 %v570_v37 }
 0x16e   :  { %v988_v38 = vpop.eup %987 }
 0x16f   :  { %v990_v39 = vpop.eup %989  ;;  %v579_v40 = vadd.f32 1.0, %v988_v38 }
 0x170   :  { %v585_v41 = vadd.f32 1.0, %v990_v39  ;;  %v992_v42 = vpop.eup %991 }
 0x171   :  { %995 = vrcp.f32 %v579_v40  ;;  %v994_v43 = vpop.eup %993  ;;  %v592_v46 = vadd.f32 1.0, %v992_v42 }
 0x172   :  { %997 = vrcp.f32 %v585_v41 }
 0x173   :  { %999 = vrcp.f32 %v592_v46 }
 0x17b   :  { %v996_v45 = vpop.eup %995 }
 0x17c   :  { %v998_v47 = vpop.eup %997  ;;  %v597_v48 = vmul.f32 %v996_v45, %v994_v43 }
 0x17d   :  { %v596_v49 = vmul.f32 %v998_v47, %v595_v44  ;;  %v1000_v51 = vpop.eup %999 }
 0x17f   :  { %v598_v50 = vadd.f32 %v597_v48, %v596_v49 }
 0x181   :  { %1001 = vtanh.f32 %v598_v50  ;;  %716 = vst [vmem:[#allocation13] sm:$0xff] %v598_v50 }
 0x18b   :  { %v1002_v52 = vpop.eup %1001 }
 0x18c   :  { %v600_v53 = vmul.f32 %v1002_v52, %v1000_v51 }
 0x18e   :  { %v601_v54 = vpack.c.bf16 %v600_v53, %v600_v53  ;;  %715 = vst [vmem:[#allocation11] sm:$0xff] %v600_v53 }
 0x190   :  { %865 = vmatmul.mubr.bf16.vlgmr.msra.gmra.mrb[4].mxu0 %v601_v54 }
 0x191   :  { %1104 = shalt.err (!%p1101_p8)
}
 0x192   :  { %s1105_s15 = scalar_lea.hbm %s1324_s7, 128 }
 0x193   :  { %p1106_p9 = scmp.ne.s32.totalorder %s1324_s7, %s1105_s15  ;;  %p1109_p10 = scmp.lt.u32.totalorder %s1105_s15, %s1324_s7 }
 0x195   :  { %p1111_p11 = pnand %p1109_p10, %p1106_p9 }
 0x197   :  { %1114 = shalt.err (!%p1111_p11)
}
 0x198   :  { %736 = dma.vmem_to_hbm [thread:$0]  %s734_s11, 128, %s1324_s7, [#allocation12]  }
 0x199   :  { %s1180_s20 = smov [#allocation13]  }
 0x19a   :  { %s743_s21 = sshll.u32 %s1180_s20, 4  ;;  %s744_s21 = int_to_ptr.vmem [resolvable:$true] %s743_s21 }
 0x19b   :  { %s1115_s22 = scalar_lea.vmem %s744_s21, 128  ;;  %p1120_p13 = scmp.lt.s32.totalorder %s744_s21, %s744_s21 }
 0x19c   :  { %p1116_p12 = scmp.ne.s32.totalorder %s744_s21, %s1115_s22  ;;  %p1121_p0 = scmp.lt.s32.totalorder %s1115_s22, %s1115_s22 }
 0x19e   :  { %p1122_p1 = por %p1121_p0, %p1120_p13 }
 0x1a0   :  { %p1123_p2 = pnand %p1122_p1, %p1116_p12 }
 0x1a2   :  { %1126 = shalt.err (!%p1123_p2)
}
 0x1a3   :  { %s1127_s25 = scalar_lea.hbm %s1325_s8, 128 }
 0x1a4   :  { %p1128_p3 = scmp.ne.s32.totalorder %s1325_s8, %s1127_s25  ;;  %p1131_p4 = scmp.lt.u32.totalorder %s1127_s25, %s1325_s8 }
 0x1a6   :  { %p1133_p5 = pnand %p1131_p4, %p1128_p3 }
 0x1a8   :  { %1136 = shalt.err (!%p1133_p5)
}
 0x1a9   :  { %746 = dma.vmem_to_hbm [thread:$0]  %s744_s21, 128, %s1325_s8, [#allocation12]   ;;  %v830_v55 = vld [vmem:[%s1322_s5] ss:$0 sm:$0xff] }
 0x1aa   :  { %s1181_s4 = smov [#allocation10]  }
 0x1ab   :  { %s723_s10 = sshll.u32 %s1181_s4, 4  ;;  %s724_s10 = int_to_ptr.vmem [resolvable:$true] %s723_s10 }
 0x1ac   :  { %s1137_s3 = scalar_lea.vmem %s724_s10, 128  ;;  %p1142_p7 = scmp.lt.s32.totalorder %s724_s10, %s724_s10 }
 0x1ad   :  { %p1138_p6 = scmp.ne.s32.totalorder %s724_s10, %s1137_s3  ;;  %p1143_p8 = scmp.lt.s32.totalorder %s1137_s3, %s1137_s3 }
 0x1af   :  { %p1144_p9 = por %p1143_p8, %p1142_p7 }
 0x1b1   :  { %p1145_p10 = pnand %p1144_p9, %p1138_p6 }
 0x263   :  { %v707_v56 = vpop.f32.mrb[4].mxu0 }
 0x264   :  { %v708_v57 = vadd.f32 %v830_v55, %v707_v56  ;;  %v866_v58 = vpop.f32.mrb[5].mxu0 }
 0x265   :  { %v710_v59 = vpop.f32.mrb[6].mxu0 }
 0x266   :  { %1003 = vtanh.f32 %v708_v57  ;;  %v867_v60 = vpop.f32.mrb[7].mxu0 }
 0x270   :  { %v1004_v61 = vpop.eup %1003 }
 0x271   :  { %714 = vst [vmem:[#allocation10] sm:$0xff] %v1004_v61 }
 0x272   :  { %1148 = shalt.err (!%p1145_p10)
}
 0x273   :  { %s1149_s11 = scalar_lea.hbm %s1323_s6, 128 }
 0x274   :  { %p1150_p11 = scmp.ne.s32.totalorder %s1323_s6, %s1149_s11  ;;  %p1153_p12 = scmp.lt.u32.totalorder %s1149_s11, %s1323_s6 }
 0x276   :  { %p1155_p13 = pnand %p1153_p12, %p1150_p11 }
 0x278   :  { %1158 = shalt.err (!%p1155_p13)
}
 0x279   :  { %726 = dma.vmem_to_hbm [thread:$0]  %s724_s10, 128, %s1323_s6, [#allocation4]  }
 0x27a   :  { %1165 = dma.done.wait [#allocation4], 128  }
 0x27b   :  { %1166 = vsyncadd [#allocation4], 4294967168 }
 0x27c   :  { %1167 = dma.done.wait [#allocation12], 256  }
 0x27d   :  { %1168 = vsyncadd [#allocation12], 4294967040 }
 0x27e   :  { %756 = vsyncpa [#allocation3], 1 }
 0x27f   :  { %757 = vsyncpa [#allocation6], 1 }
 0x280   :  { %758 = vsyncpa [#allocation9], 1 }
 0x281   :  { %759 = vsyncpa [#allocation4], 1 }
 0x282   :  { %760 = vsyncpa [#allocation12], 1 }

</bundles_post_ra>
